<compile_context>
chip_gen: v7x
topology: tpu7x:2x2x1
jax: 0.10.0
libtpu: 0.0.40
codegen_flags: <defaults>
</compile_context>

<pallas_src>
import jax
import jax.numpy as jnp
from jax.experimental import pallas as pl
from jax.experimental.pallas import tpu as pltpu

_LANES = 128      # vreg lane width
_SUBLANES = 8     # vreg sublane depth (f32)


def _identity_kernel(x_ref, o_ref):
    # Whole lane-dense block: one VMEM -> VMEM copy, full unmasked vst.
    o_ref[...] = x_ref[...]


def identity_pallas(x):
    """Identity forward: returns x unchanged, routed through a Pallas TPU kernel."""
    orig_shape = x.shape
    flat = x.reshape(-1)
    n = flat.shape[0]

    # Pad (statically, at trace time) so the 2-D view is (8,128)-tile aligned
    # and the last dim is exactly 128 -> lane-dense loads/stores.
    tile = _LANES * _SUBLANES
    pad = (-n) % tile
    if pad:
        flat = jnp.pad(flat, (0, pad))
    x2d = flat.reshape(-1, _LANES)
    rows = x2d.shape[0]

    out2d = pl.pallas_call(
        _identity_kernel,
        out_shape=jax.ShapeDtypeStruct((rows, _LANES), x2d.dtype),
        grid=(1,),  # single step: whole (tiny) array resident in VMEM at once
        in_specs=[pl.BlockSpec((rows, _LANES), lambda i: (0, 0))],
        out_specs=pl.BlockSpec((rows, _LANES), lambda i: (0, 0)),
        compiler_params=pltpu.CompilerParams(
            dimension_semantics=("arbitrary",)),
    )(x2d)

    # Undo padding / flattening in plain JAX (pure layout glue, no compute).
    return out2d.reshape(-1)[:n].reshape(orig_shape)


if __name__ == "__main__":
    key = jax.random.PRNGKey(0)
    # Small shape consistent with the earlier forward usage: (N, C, H, W).
    x = jax.random.normal(key, (2, 4, 16, 16), jnp.float32)

    fwd = jax.jit(identity_pallas)
    out = fwd(x)
    out = jax.block_until_ready(out)

    assert out.shape == x.shape, out.shape
    assert out.dtype == x.dtype, out.dtype
    assert bool(jnp.array_equal(out, x)), float(jnp.max(jnp.abs(out - x)))

    print("KERNEL_OK")
</pallas_src>

<mosaic_0001>
module attributes {stable_mosaic.version = 11 : i64} {
  func.func @_identity_kernel(%arg0: i32, %arg1: memref<16x128xf32, #tpu.memory_space<vmem>>, %arg2: memref<16x128xf32, #tpu.memory_space<vmem>>) attributes {dimension_semantics = [#tpu.dimension_semantics<arbitrary>], iteration_bounds = array<i64: 1>, scalar_prefetch = 0 : i64, scratch_operands = 0 : i64, tpu.core_type = #tpu.core_type<tc>, window_params = [{pipeline_mode = #tpu.pipeline_mode<synchronous>, transform_indices = @transform_0, window_bounds = array<i64: 16, 128>}, {pipeline_mode = #tpu.pipeline_mode<synchronous>, transform_indices = @transform_1, window_bounds = array<i64: 16, 128>}]} {
    %c0 = arith.constant 0 : index
    %c0_0 = arith.constant 0 : index
    %0 = vector.load %arg1[%c0, %c0_0] : memref<16x128xf32, #tpu.memory_space<vmem>>, vector<16x128xf32>
    %c0_1 = arith.constant 0 : index
    %c0_2 = arith.constant 0 : index
    %1 = vector.load %arg2[%c0_1, %c0_2] : memref<16x128xf32, #tpu.memory_space<vmem>>, vector<16x128xf32>
    tpu.vector_store %arg2[%c0_1, %c0_2], %0 {strides = array<i32>} : memref<16x128xf32, #tpu.memory_space<vmem>>, vector<16x128xf32>,
    return
  }
  func.func @transform_0(%arg0: i32) -> (i32, i32) {
    %c0_i32 = arith.constant 0 : i32
    %c0_i32_0 = arith.constant 0 : i32
    %c0_i32_1 = arith.constant 0 : i32
    return %c0_i32, %c0_i32_0 : i32, i32
  }
  func.func @transform_1(%arg0: i32) -> (i32, i32) {
    %c0_i32 = arith.constant 0 : i32
    %c0_i32_0 = arith.constant 0 : i32
    %c0_i32_1 = arith.constant 0 : i32
    return %c0_i32, %c0_i32_0 : i32, i32
  }
}

</mosaic_0001>

<bundles_post_ra>
// kernel: identity_pallas.1
= control target key start
LH: loop header
LB: loop body
LE: loop exit
PB: predicated region body
PF: predicated region fallthrough
CT: control target
= control target key end

     0   :  { %s38_s0 = inlined_call_operand.vmem [shape: f32[16,128], index: 0, kind: input, shape index: {}]   ;;  %s39_s1 = inlined_call_operand.vmem [shape: f32[16,128], index: 1, kind: output, shape index: {}]  }
   0x1   :  { %v8_v0 = vld [vmem:[%s38_s0] sm:$0xff]  ;;  %v9_v1 = vld [vmem:[%s38_s0 + $0x8] sm:$0xff] }
   0x2   :  { %10 = vst [vmem:[%s39_s1] sm:$0xff] %v8_v0  ;;  %11 = vst [vmem:[%s39_s1 + $0x8] sm:$0xff] %v9_v1 }

</bundles_post_ra>
